<compile_context>
chip_gen: v5e
topology: v5e:2x2
jax: 0.10.0
libtpu: 0.0.40
codegen_flags: <defaults>
</compile_context>

<pallas_src>
import functools

import jax
import jax.numpy as jnp
from jax.experimental import pallas as pl
from jax.experimental.pallas import tpu as pltpu

_SUBLANE = 8
_LANE = 128


def _kpl2_kernel(pred_ref, tgt_ref, out_ref, acc_ref, *,
                 coord_dim, width, rows_valid, use_roll, has_edge):
    """Accumulates sum over (batch rows, keypoints) of per-keypoint L2 dist."""
    b = pl.program_id(0)
    nb = pl.num_programs(0)
    tb, nd = pred_ref.shape

    @pl.when(b == 0)
    def _init():
        acc_ref[...] = jnp.zeros_like(acc_ref)

    # One aligned full-tile pass: diff + square (f32).
    d = pred_ref[...].astype(jnp.float32) - tgt_ref[...].astype(jnp.float32)
    d2 = d * d

    # group[:, l] = sum_{s < D} d2[:, l + s]; at keypoint-start lanes
    # (l % D == 0) this is exactly that keypoint's squared L2 distance.
    if use_roll:
        # pltpu.roll(d2, nd - s)[:, l] == d2[:, (l + s) % nd]; wrapped lanes
        # are never keypoint starts, so the finalize lane mask drops them.
        group = d2
        for s in range(1, coord_dim):
            group = group + pltpu.roll(d2, shift=nd - s, axis=1)
    else:
        group = d2[:, 0:width]
        for s in range(1, coord_dim):
            group = group + d2[:, s:s + width]

    dist = jnp.sqrt(group)      # (tb, width); keypoint-start lanes meaningful

    if has_edge:
        @pl.when(b < nb - 1)
        def _full_block():
            acc_ref[...] += jnp.sum(dist, axis=0, keepdims=True)

        @pl.when(b == nb - 1)
        def _edge_block():
            # Only the single partial block pays for the row mask.  Keep it a
            # SELECT (not mask-multiply): out-of-range rows may hold NaN/Inf.
            row = jax.lax.broadcasted_iota(jnp.int32, dist.shape, 0)
            keep = (b * tb + row) < rows_valid
            acc_ref[...] += jnp.sum(jnp.where(keep, dist, 0.0),
                                    axis=0, keepdims=True)
    else:
        acc_ref[...] += jnp.sum(dist, axis=0, keepdims=True)

    @pl.when(b == nb - 1)
    def _finalize():
        # Grid-invariant keypoint-start lane mask, applied once on the tiny
        # accumulator; single cross-lane reduction; lane-dense output slab
        # (only element [0, 0] is consumed by the wrapper).
        lane = jax.lax.broadcasted_iota(jnp.int32, acc_ref.shape, 1)
        per_kp = jnp.where(lane % coord_dim == 0, acc_ref[...], 0.0)
        out_ref[...] = jnp.zeros_like(out_ref) + jnp.sum(per_kp)


def keypoint_l2_criterion(keypoints_pred, keypoints_target,
                          *, target_block_bytes=2 << 20):
    """Mean per-keypoint L2 distance.  keypoints_*: (B, N, D) float arrays."""
    assert keypoints_pred.shape == keypoints_target.shape
    B, N, D = keypoints_pred.shape
    ND = N * D

    # Zero-copy flatten: keypoint*coord axis on TPU lanes.
    pred = keypoints_pred.reshape(B, ND)
    tgt = keypoints_target.reshape(B, ND)

    # Only tiny inputs (fewer rows than one sublane group) get padded; real
    # workloads stay zero-copy and edge rows are masked inside the kernel.
    b_work = B
    if b_work < _SUBLANE:
        pad = _SUBLANE - b_work
        pred = jnp.pad(pred, ((0, pad), (0, 0)))
        tgt = jnp.pad(tgt, ((0, pad), (0, 0)))
        b_work = _SUBLANE

    # Rows per block: multiple of 8, ~target_block_bytes per input block when
    # sized on the lane-padded width (what actually occupies VMEM), and never
    # larger than the row-aligned array.
    padded_nd = pl.cdiv(ND, _LANE) * _LANE
    rows = target_block_bytes // (padded_nd * 4)
    tb = max(_SUBLANE, (rows // _SUBLANE) * _SUBLANE)
    tb = min(tb, (b_work // _SUBLANE) * _SUBLANE)

    nb = pl.cdiv(b_work, tb)              # batch-chunk blocks
    has_edge = (b_work % tb) != 0         # last block's extent passes the batch
    use_roll = (D > 1) and (ND % _LANE == 0)
    width = ND if use_roll else ND - (D - 1)

    kernel = functools.partial(
        _kpl2_kernel,
        coord_dim=D,
        width=width,
        rows_valid=b_work,
        use_roll=use_roll,
        has_edge=has_edge,
    )

    # TODO(synk): on v7x (2 TensorCores) split the batch chunks across cores
    # with a leading CORE_PARALLEL grid axis (or pl.core_map); a plain
    # "parallel" axis only wastes a duplicated-block DMA on 1-TC chips.
    out = pl.pallas_call(
        kernel,
        out_shape=jax.ShapeDtypeStruct((_SUBLANE, _LANE), jnp.float32),
        grid_spec=pltpu.PrefetchScalarGridSpec(
            num_scalar_prefetch=0,
            grid=(nb,),
            in_specs=[
                pl.BlockSpec((tb, ND), lambda b: (b, 0)),
                pl.BlockSpec((tb, ND), lambda b: (b, 0)),
            ],
            out_specs=pl.BlockSpec((_SUBLANE, _LANE), lambda b: (0, 0)),
            scratch_shapes=[pltpu.VMEM((1, width), jnp.float32)],
        ),
        compiler_params=pltpu.CompilerParams(
            dimension_semantics=("arbitrary",),
            vmem_limit_bytes=32 * 1024 * 1024,
        ),
    )(pred, tgt)

    # Normalize by the true keypoint count (padded/masked rows contribute 0).
    return out[0, 0] / jnp.float32(B * N)


def _reference(pred, tgt):
    return jnp.mean(jnp.sqrt(jnp.sum((pred - tgt) ** 2, axis=2)))


if __name__ == "__main__":
    key = jax.random.PRNGKey(0)
    k1, k2, k3, k4, k5, k6 = jax.random.split(key, 6)

    # Case 1: small shapes matching the module's typical use (D=2, non-128
    # lane width -> value-slice path, tiny-batch pad path).
    B, N, D = 2, 16, 2
    keypoints_pred = jax.random.normal(k1, (B, N, D), dtype=jnp.float32)
    keypoints_target = jax.random.normal(k2, (B, N, D), dtype=jnp.float32)
    loss = jax.block_until_ready(
        keypoint_l2_criterion(keypoints_pred, keypoints_target))
    ref = _reference(keypoints_pred, keypoints_target)
    assert jnp.allclose(loss, ref, rtol=2e-5, atol=1e-6), (loss, ref)

    # Case 2: odd sizes + tiny block target -> multi-block grid, partial edge
    # block with in-kernel row masking, D=3 (value-slice path).
    p2 = jax.random.normal(k3, (100, 17, 3), dtype=jnp.float32)
    t2 = jax.random.normal(k4, (100, 17, 3), dtype=jnp.float32)
    loss2 = jax.block_until_ready(
        keypoint_l2_criterion(p2, t2, target_block_bytes=8192))
    ref2 = _reference(p2, t2)
    assert jnp.allclose(loss2, ref2, rtol=2e-5, atol=1e-6), (loss2, ref2)

    # Case 3: 128-aligned lane width (N*D = 384) -> pltpu.roll path, with a
    # multi-block grid and a partial edge block.
    p3 = jax.random.normal(k5, (42, 128, 3), dtype=jnp.float32)
    t3 = jax.random.normal(k6, (42, 128, 3), dtype=jnp.float32)
    loss3 = jax.block_until_ready(
        keypoint_l2_criterion(p3, t3, target_block_bytes=16384))
    ref3 = _reference(p3, t3)
    assert jnp.allclose(loss3, ref3, rtol=2e-5, atol=1e-6), (loss3, ref3)

    print("KERNEL_OK")
</pallas_src>

<mosaic_0001>
module attributes {stable_mosaic.version = 11 : i64} {
  func.func @_kpl2_kernel(%arg0: i32, %arg1: memref<8x32xf32, #tpu.memory_space<vmem>>, %arg2: memref<8x32xf32, #tpu.memory_space<vmem>>, %arg3: memref<8x128xf32, #tpu.memory_space<vmem>>, %arg4: memref<1x31xf32, #tpu.memory_space<vmem>>) attributes {dimension_semantics = [#tpu.dimension_semantics<arbitrary>], iteration_bounds = array<i64: 1>, scalar_prefetch = 0 : i64, scratch_operands = 1 : i64, tpu.core_type = #tpu.core_type<tc>, window_params = [{transform_indices = @transform_0, window_bounds = array<i64: 8, 32>}, {transform_indices = @transform_1, window_bounds = array<i64: 8, 32>}, {pipeline_mode = #tpu.pipeline_mode<synchronous>, transform_indices = @transform_2, window_bounds = array<i64: 8, 128>}]} {
    %c0_i32 = arith.constant 0 : i32
    %0 = arith.cmpi eq, %arg0, %c0_i32 : i32
    %1 = arith.extui %0 : i1 to i32
    %c0_i32_0 = arith.constant 0 : i32
    %2 = arith.cmpi ne, %1, %c0_i32_0 : i32
    scf.if %2 {
      %cst_10 = arith.constant 0.000000e+00 : f32
      %19 = vector.broadcast %cst_10 : f32 to vector<1x31xf32>
      %c0_11 = arith.constant 0 : index
      %c0_12 = arith.constant 0 : index
      %20 = vector.load %arg4[%c0_11, %c0_12] : memref<1x31xf32, #tpu.memory_space<vmem>>, vector<1x31xf32>
      tpu.vector_store %arg4[%c0_11, %c0_12], %19 {strides = array<i32>} : memref<1x31xf32, #tpu.memory_space<vmem>>, vector<1x31xf32>,
    } else {
    }
    %c0 = arith.constant 0 : index
    %c0_1 = arith.constant 0 : index
    %3 = vector.load %arg1[%c0, %c0_1] : memref<8x32xf32, #tpu.memory_space<vmem>>, vector<8x32xf32>
    %c0_2 = arith.constant 0 : index
    %c0_3 = arith.constant 0 : index
    %4 = vector.load %arg2[%c0_2, %c0_3] : memref<8x32xf32, #tpu.memory_space<vmem>>, vector<8x32xf32>
    %5 = arith.subf %3, %4 : vector<8x32xf32>
    %6 = arith.mulf %5, %5 : vector<8x32xf32>
    %7 = vector.extract_strided_slice %6 {offsets = [0, 0], sizes = [8, 31], strides = [1, 1]} : vector<8x32xf32> to vector<8x31xf32>
    %8 = vector.extract_strided_slice %6 {offsets = [0, 1], sizes = [8, 31], strides = [1, 1]} : vector<8x32xf32> to vector<8x31xf32>
    %9 = arith.addf %7, %8 : vector<8x31xf32>
    %10 = math.sqrt %9 : vector<8x31xf32>
    %c0_4 = arith.constant 0 : index
    %c0_5 = arith.constant 0 : index
    %11 = vector.load %arg4[%c0_4, %c0_5] : memref<1x31xf32, #tpu.memory_space<vmem>>, vector<1x31xf32>
    %cst = arith.constant dense<0.000000e+00> : vector<31xf32>
    %12 = vector.multi_reduction <add>, %10, %cst [0] : vector<8x31xf32> to vector<31xf32>
    %13 = vector.shape_cast %12 : vector<31xf32> to vector<1x31xf32>
    %14 = arith.addf %11, %13 : vector<1x31xf32>
    %c0_6 = arith.constant 0 : index
    %c0_7 = arith.constant 0 : index
    %15 = vector.load %arg4[%c0_6, %c0_7] : memref<1x31xf32, #tpu.memory_space<vmem>>, vector<1x31xf32>
    tpu.vector_store %arg4[%c0_6, %c0_7], %14 {strides = array<i32>} : memref<1x31xf32, #tpu.memory_space<vmem>>, vector<1x31xf32>,
    %c0_i32_8 = arith.constant 0 : i32
    %16 = arith.cmpi eq, %arg0, %c0_i32_8 : i32
    %17 = arith.extui %16 : i1 to i32
    %c0_i32_9 = arith.constant 0 : i32
    %18 = arith.cmpi ne, %17, %c0_i32_9 : i32
    scf.if %18 {
      %19 = tpu.iota {dimensions = array<i32: 1>} : vector<1x31xi32>
      %c2_i32 = arith.constant 2 : i32
      %c0_i32_10 = arith.constant 0 : i32
      %20 = arith.cmpi eq, %c2_i32, %c0_i32_10 : i32
      %c1_i32 = arith.constant 1 : i32
      %21 = arith.select %20, %c1_i32, %c2_i32 : i32
      %22 = vector.broadcast %21 : i32 to vector<1x31xi32>
      %23 = arith.remsi %19, %22 : vector<1x31xi32>
      %c0_i32_11 = arith.constant 0 : i32
      %24 = vector.broadcast %c0_i32_11 : i32 to vector<1x31xi32>
      %25 = arith.cmpi ne, %23, %24 : vector<1x31xi32>
      %c0_i32_12 = arith.constant 0 : i32
      %26 = vector.broadcast %c0_i32_12 : i32 to vector<1x31xi32>
      %27 = arith.cmpi slt, %23, %26 : vector<1x31xi32>
      %c0_i32_13 = arith.constant 0 : i32
      %28 = arith.cmpi slt, %21, %c0_i32_13 : i32
      %29 = vector.broadcast %28 : i1 to vector<1x31xi1>
      %30 = vector.broadcast %29 : vector<1x31xi1> to vector<1x31xi1>
      %31 = arith.xori %27, %30 : vector<1x31xi1>
      %32 = arith.andi %31, %25 : vector<1x31xi1>
      %33 = vector.broadcast %21 : i32 to vector<1x31xi32>
      %34 = arith.addi %23, %33 : vector<1x31xi32>
      %35 = arith.select %32, %34, %23 : vector<1x31xi1>, vector<1x31xi32>
      %c0_i32_14 = arith.constant 0 : i32
      %36 = vector.broadcast %c0_i32_14 : i32 to vector<1x31xi32>
      %37 = arith.cmpi eq, %35, %36 : vector<1x31xi32>
      %c0_15 = arith.constant 0 : index
      %c0_16 = arith.constant 0 : index
      %38 = vector.load %arg4[%c0_15, %c0_16] : memref<1x31xf32, #tpu.memory_space<vmem>>, vector<1x31xf32>
      %cst_17 = arith.constant 0.000000e+00 : f32
      %39 = vector.broadcast %cst_17 : f32 to vector<1x31xf32>
      %40 = arith.select %37, %38, %39 : vector<1x31xi1>, vector<1x31xf32>
      %cst_18 = arith.constant 0.000000e+00 : f32
      %41 = vector.broadcast %cst_18 : f32 to vector<8x128xf32>
      %42 = vector.shape_cast %40 : vector<1x31xf32> to vector<1x1x31xf32>
      %cst_19 = arith.constant dense<0.000000e+00> : vector<1xf32>
      %43 = vector.multi_reduction <add>, %42, %cst_19 [1, 2] : vector<1x1x31xf32> to vector<1xf32>
      %44 = vector.shape_cast %43 : vector<1xf32> to vector<1x1x1xf32>
      %45 = vector.extract %44[0, 0, 0] : f32 from vector<1x1x1xf32>
      %46 = vector.broadcast %45 : f32 to vector<8x128xf32>
      %47 = arith.addf %41, %46 : vector<8x128xf32>
      %c0_20 = arith.constant 0 : index
      %c0_21 = arith.constant 0 : index
      %48 = vector.load %arg3[%c0_20, %c0_21] : memref<8x128xf32, #tpu.memory_space<vmem>>, vector<8x128xf32>
      tpu.vector_store %arg3[%c0_20, %c0_21], %47 {strides = array<i32>} : memref<8x128xf32, #tpu.memory_space<vmem>>, vector<8x128xf32>,
    } else {
    }
    return
  }
  func.func @transform_0(%arg0: i32) -> (i32, i32) {
    %c0_i32 = arith.constant 0 : i32
    %c0_i32_0 = arith.constant 0 : i32
    return %arg0, %c0_i32 : i32, i32
  }
  func.func @transform_1(%arg0: i32) -> (i32, i32) {
    %c0_i32 = arith.constant 0 : i32
    %c0_i32_0 = arith.constant 0 : i32
    return %arg0, %c0_i32 : i32, i32
  }
  func.func @transform_2(%arg0: i32) -> (i32, i32) {
    %c0_i32 = arith.constant 0 : i32
    %c0_i32_0 = arith.constant 0 : i32
    %c0_i32_1 = arith.constant 0 : i32
    return %c0_i32, %c0_i32_0 : i32, i32
  }
}

</mosaic_0001>

<bundles_post_ra>
// kernel: tpu_custom_call.1
= control target key start
LH: loop header
LB: loop body
LE: loop exit
PB: predicated region body
PF: predicated region fallthrough
CT: control target
= control target key end

     0   :  { %7 = vsyncpa [#allocation4], 0  ;;  %s249_s0 = inlined_call_operand.hbm [shape: f32[8,32], index: 0, kind: input, shape index: {}]   ;;  %s250_s1 = inlined_call_operand.hbm [shape: f32[8,32], index: 1, kind: input, shape index: {}]   ;;  %s251_s2 = inlined_call_operand.hbm [shape: f32[8,128], index: 2, kind: output, shape index: {}]  }
   0x1   :  { %8 = vsyncpa [#allocation7], 0 }
   0x2   :  { %9 = vsyncpa [#allocation5], 0  ;;  %s15_s11 = sshll.u32 %s249_s0, 4  ;;  %s217_s12 = smov [#allocation3]   ;;  %s16_s11 = int_to_ptr.hbm [resolvable:$true] %s15_s11 }
   0x3   :  { %s17_s13 = sshll.u32 %s217_s12, 4  ;;  %s26_s16 = sshll.u32 %s250_s1, 4  ;;  %s18_s13 = int_to_ptr.vmem [resolvable:$true] %s17_s13  ;;  %s27_s16 = int_to_ptr.hbm [resolvable:$true] %s26_s16 }
   0x4   :  { %20 = dma.hbm_to_vmem [thread:$0]  %s16_s11, 128, %s18_s13, [#allocation4]  }
   0x5   :  { %s218_s17 = smov [#allocation6]  }
   0x6   :  { %s28_s18 = sshll.u32 %s218_s17, 4  ;;  %s29_s18 = int_to_ptr.vmem [resolvable:$true] %s28_s18 }
   0x7   :  { %31 = dma.hbm_to_vmem [thread:$0]  %s27_s16, 128, %s29_s18, [#allocation7]  }
   0x8   :  { %211 = dma.done.wait [#allocation4], 128  }
   0x9   :  { %212 = vsyncadd [#allocation4], 4294967168 }
   0xa   :  { %213 = dma.done.wait [#allocation7], 128  }
   0xb   :  { %214 = vsyncadd [#allocation7], 4294967168  ;;  %v46_v0 = vld [vmem:[#allocation3] sm:$0xff]  ;;  %v47_v1 = vld [vmem:[#allocation6] sm:$0xff]  ;;  %s219_s0 = smov 127   ;;  %vm44_vm0 = vcmask 245760   ;;  %v82_v22 = vlaneseq }
   0xc   :  { %v48_v2 = vsub.f32 %v46_v0, %v47_v1  ;;  %v220_v4 = vmov 0.0   ;;  %vm68_vm2 = vcmask 252928   ;;  %s221_s1 = smov [#allocation8]   ;;  %s119_s22 = sshll.u32 %s251_s2, 4  ;;  %s120_s22 = int_to_ptr.hbm [resolvable:$true] %s119_s22 }
   0xd   :  { %45 = vst.msk [vmem:[#allocation2] sm:$0x1] %vm44_vm0, %v220_v4  ;;  %v83_v26 = vand.u32 127, %v82_v22  ;;  %s117_s19 = sshll.u32 %s221_s1, 4  ;;  %s118_s19 = int_to_ptr.vmem [resolvable:$true] %s117_s19 }
   0xe   :  { %v49_v3 = vmul.f32 %v48_v2, %v48_v2 }
   0xf   :  { %v88_v28 = vand.u32 1, %v83_v26 }
  0x10   :  { %51 = vrot.lane.b32.xlu0 %v49_v3, %s219_s0 }
  0x11   :  { %vm96_vm4 = vcmp.eq.s32.totalorder %v88_v28, 0 }
  0x14   :  { %v67_v24 = vld [vmem:[#allocation2] sm:$0x1] }
  0x82   :  { %v52_v5 = vpop.permute.xlu0 %51 }
  0x83   :  { %v54_v6 = vadd.f32 %v52_v5, %v49_v3 }
  0x85   :  { %137 = vrsqrt.f32 %v54_v6  ;;  %vm62_vm1 = vcmp.eq.f32.partialorder %v54_v6, inf  ;;  %v65_v14 = vand.u32 2147483648, %v54_v6  ;;  %vm64_vm3 = vcmp.eq.f32.partialorder %v54_v6, 0.0 }
  0x8b   :  { %v138_v7 = vpop.eup %137 }
  0x8c   :  { %v56_v8 = vmul.f32 %v138_v7, %v54_v6 }
  0x8e   :  { %v57_v9 = vmul.f32 %v138_v7, %v56_v8 }
  0x90   :  { %v58_v10 = vmul.f32 0.5, %v57_v9 }
  0x92   :  { %v59_v11 = vsub.f32 1.5, %v58_v10 }
  0x94   :  { %v60_v12 = vmul.f32 %v138_v7, %v59_v11 }
  0x96   :  { %v61_v13 = vmul.f32 %v60_v12, %v54_v6 }
  0x98   :  { %v63_v15 = vsel %vm62_vm1, %v54_v6, %v61_v13 }
  0x99   :  { %v66_v16 = vsel %vm64_vm3, %v65_v14, %v63_v15 }
  0x9a   :  { %v69_v17 = vsel %vm68_vm2, %v66_v16, 0.0 }
  0x9b   :  { %v70_v18 = vrot.slane %v69_v17, 4 }
  0x9d   :  { %v71_v19 = vadd.f32 %v70_v18, %v69_v17 }
  0x9f   :  { %v72_v20 = vrot.slane %v71_v19, 2 }
  0xa1   :  { %v73_v21 = vadd.f32 %v72_v20, %v71_v19 }
  0xa3   :  { %v74_v23 = vrot.slane %v73_v21, 1 }
  0xa5   :  { %v75_v25 = vadd.f32 %v74_v23, %v73_v21 }
  0xa7   :  { %v76_v27 = vadd.f32 %v75_v25, %v67_v24 }
  0xa9   :  { %78 = vst.msk [vmem:[#allocation2] sm:$0x1] %vm44_vm0, %v76_v27 }
  0xb0   :  { %v97_v29 = vld [vmem:[#allocation2] sm:$0x1] }
  0xb1   :  { %v98_v30 = vsel %vm96_vm4, %v97_v29, 0.0 }
  0xb2   :  { %v99_v31 = vsel %vm44_vm0, %v98_v30, 0.0 }
  0xb3   :  { %100 = vadd.xlane.f32.xlu0 %v99_v31 }
 0x126   :  { %v101_v32 = vpop.xlane.xlu0 %100 }
 0x127   :  { %v102_v33 = vrot.slane %v101_v32, 4 }
 0x129   :  { %v103_v34 = vadd.f32 %v102_v33, %v101_v32 }
 0x12b   :  { %v104_v35 = vrot.slane %v103_v34, 2 }
 0x12d   :  { %v105_v36 = vadd.f32 %v104_v35, %v103_v34 }
 0x12f   :  { %v106_v37 = vrot.slane %v105_v36, 1 }
 0x131   :  { %v107_v38 = vadd.f32 %v106_v37, %v105_v36 }
 0x133   :  { %130 = vpush %v107_v38 }
 0x164   :  { %s131_s23 = spop %130 }
 0x165   :  { %v109_v39 = vstv %s131_s23 }
 0x166   :  { %111 = vst [vmem:[#allocation8] sm:$0xff] %v109_v39 }
 0x167   :  { %122 = dma.vmem_to_hbm [thread:$0]  %s118_s19, 128, %s120_s22, [#allocation5]  }
 0x168   :  { %215 = dma.done.wait [#allocation5], 128  }
 0x169   :  { %216 = vsyncadd [#allocation5], 4294967168 }
 0x16a   :  { %127 = vsyncpa [#allocation4], 1 }
 0x16b   :  { %128 = vsyncpa [#allocation7], 1 }
 0x16c   :  { %129 = vsyncpa [#allocation5], 1 }

</bundles_post_ra>
